<compile_context>
chip_gen: v7x
topology: tpu7x:2x2x1
jax: 0.10.0
libtpu: 0.0.40
codegen_flags: <defaults>
</compile_context>

<pallas_src>
import functools

import jax
import jax.numpy as jnp
from jax import lax
from jax.experimental import pallas as pl
from jax.experimental.pallas import tpu as pltpu


def _round_up(x, m):
    return ((x + m - 1) // m) * m


def _sublane_align(itemsize):
    # Min second-to-last tile dim per dtype width: f32 -> 8, bf16 -> 16, int8/fp8 -> 32.
    return max(8, 32 // max(1, itemsize))


def _vmem_caps():
    """Return (physical VMEM bytes, budget for this kernel's buffers)."""
    try:
        cap = int(pltpu.get_tpu_info().vmem_capacity_bytes)
    except Exception:
        cap = 64 * 1024 * 1024          # conservative (v7x-sized) fallback
    # ~1/3 of physical VMEM for this kernel's windows:
    #   v5e/v6e (128 MiB) -> 40 MiB, v7x (64 MiB) -> ~21 MiB.
    budget = min(cap // 3, 40 * 1024 * 1024)
    budget = max(budget, 8 * 1024 * 1024)
    return cap, budget


def _gap_kernel(x_ref, o_ref, acc_ref, *, hw, chunk, inv_hw, needs_mask, lane_dense):
    # x_ref:   (R, chunk)        rows of flattened batch*channel, spatial on lanes
    # o_ref:   (R, 1)            per-row mean (written on the last spatial chunk)
    # acc_ref: (R, 128) / (R, 1) f32 running spatial sum, persists across k axis
    k = pl.program_id(1)
    last = pl.num_programs(1) - 1

    @pl.when(k == 0)
    def _():
        acc_ref[...] = jnp.zeros_like(acc_ref)

    def accumulate(masked):
        if lane_dense:
            # Pure VALU adds of lane-aligned 128-wide slices; the cross-lane
            # (XLU) reduce is deferred to the single finalize step.
            n_groups = chunk // 128

            def load_group(j):
                xg = x_ref[:, j * 128:(j + 1) * 128].astype(jnp.float32)
                if masked:
                    col = k * chunk + j * 128 + lax.broadcasted_iota(
                        jnp.int32, xg.shape, 1)
                    xg = jnp.where(col < hw, xg, 0.0)
                return xg

            s = load_group(0)
            for j in range(1, n_groups):
                s = s + load_group(j)
            acc_ref[...] += s
        else:
            x = x_ref[...].astype(jnp.float32)
            if masked:
                col = k * chunk + lax.broadcasted_iota(jnp.int32, x.shape, 1)
                x = jnp.where(col < hw, x, 0.0)
            acc_ref[...] += jnp.sum(x, axis=-1, keepdims=True)

    if needs_mask:
        # Only the last spatial chunk has padded tail lanes: keep the
        # iota/compare/select work off the hot (non-tail) chunks.
        @pl.when(k != last)
        def _():
            accumulate(masked=False)

        @pl.when(k == last)
        def _():
            accumulate(masked=True)
    else:
        accumulate(masked=False)

    @pl.when(k == last)
    def _():
        if lane_dense:
            total = jnp.sum(acc_ref[...], axis=-1, keepdims=True)
        else:
            total = acc_ref[...]
        o_ref[...] = (total * inv_hw).astype(o_ref.dtype)


def global_avg_pool2d(x, *, max_spatial_chunk=8192, max_rows_per_tile=None):
    """x: (N, C, H, W) -> (N, C), mean over spatial dims.  Matches
    F.avg_pool2d(x, kernel_size=x.size()[2:]).view(-1, x.size(1))."""
    N, C, H, W = x.shape
    HW = H * W
    rows = N * C
    itemsize = jnp.dtype(x.dtype).itemsize
    sub = _sublane_align(itemsize)

    # Free, contiguous reshape: the reduction axis (H*W) goes on lanes.
    x2d = x.reshape(rows, HW)

    # Spatial chunking: single full-extent block when small enough, else
    # fixed 128-multiple chunks (long contiguous HBM runs, few k steps).
    max_spatial_chunk = max(128, _round_up(max_spatial_chunk, 128))
    if HW <= max_spatial_chunk:
        chunk = HW                      # block dim == full dim -> always legal
    else:
        chunk = max_spatial_chunk
    needs_mask = (HW % chunk) != 0
    lane_dense = (chunk % 128) == 0
    chunk_padded = _round_up(chunk, 128)   # lanes actually occupied in VMEM

    # Row tile: fill the per-generation VMEM budget.  Per row we pay for the
    # double-buffered input window, the lane-padded double-buffered output
    # block and the f32 accumulator scratch.
    cap, budget = _vmem_caps()
    in_row = 2 * chunk_padded * itemsize         # 2 pipeline buffers
    out_row = 2 * 128 * itemsize                 # (r,1) pads to 128 lanes, x2 buffers
    acc_row = 128 * 4                            # (r,128) f32 (or padded (r,1))
    bytes_per_row = in_row + out_row + acc_row

    r = max(sub, budget // bytes_per_row)
    if max_rows_per_tile is not None:
        r = min(r, max_rows_per_tile)
    r = min(r, _round_up(rows, sub))
    r = max(sub, (r // sub) * sub)

    # Keep >=2 steps on the parallel row axis when rows allow it, so both
    # v7x TensorCores can stream HBM (no-op on 1-TC chips / tiny inputs).
    if pl.cdiv(rows, r) == 1:
        r_half = _round_up(pl.cdiv(rows, 2), sub)
        if r_half < r:
            r = r_half

    grid = (pl.cdiv(rows, r), pl.cdiv(HW, chunk))

    acc_shape = (r, 128) if lane_dense else (r, 1)
    vmem_limit = int(min(max(cap - 4 * 1024 * 1024, 32 * 1024 * 1024),
                         budget + 16 * 1024 * 1024))

    kernel = functools.partial(
        _gap_kernel, hw=HW, chunk=chunk, inv_hw=1.0 / HW,
        needs_mask=needs_mask, lane_dense=lane_dense,
    )

    out = pl.pallas_call(
        kernel,
        out_shape=jax.ShapeDtypeStruct((rows, 1), x.dtype),
        grid_spec=pltpu.PrefetchScalarGridSpec(
            num_scalar_prefetch=0,
            grid=grid,
            in_specs=[pl.BlockSpec((r, chunk), lambda i, k: (i, k))],
            out_specs=pl.BlockSpec((r, 1), lambda i, k: (i, 0)),
            scratch_shapes=[pltpu.VMEM(acc_shape, jnp.float32)],
        ),
        compiler_params=pltpu.CompilerParams(
            dimension_semantics=("parallel", "arbitrary"),
            vmem_limit_bytes=vmem_limit,
        ),
    )(x2d)

    return out.reshape(N, C)


if __name__ == "__main__":
    key = jax.random.PRNGKey(0)

    # GlobalAvgPool2d has no parameters; just build deterministic inputs.
    N, C, H, W = 2, 4, 16, 16
    x = jax.random.normal(key, (N, C, H, W), dtype=jnp.float32)
    out = jax.block_until_ready(global_avg_pool2d(x))
    ref = jnp.mean(x, axis=(2, 3)).reshape(-1, C)
    assert out.shape == (N, C), out.shape
    assert jnp.allclose(out, ref, atol=1e-5, rtol=1e-5), "mismatch vs reference"

    # Chunked reduction with masked tail + lane-dense accumulator:
    # HW = 200, forced chunk = 128 -> 2 chunks, masked last chunk.
    x2 = jax.random.normal(jax.random.PRNGKey(1), (1, 8, 10, 20), dtype=jnp.float32)
    out2 = jax.block_until_ready(global_avg_pool2d(x2, max_spatial_chunk=128))
    ref2 = jnp.mean(x2, axis=(2, 3)).reshape(-1, 8)
    assert jnp.allclose(out2, ref2, atol=1e-5, rtol=1e-5), "mismatch (chunked/masked)"

    # Non-128-multiple full-extent chunk -> (r,1) accumulator fallback path.
    out3 = jax.block_until_ready(global_avg_pool2d(x2))
    assert jnp.allclose(out3, ref2, atol=1e-5, rtol=1e-5), "mismatch (non-lane-dense)"

    # bf16 input: exercises dtype-aware (16-sublane) row alignment.
    x4 = jax.random.normal(jax.random.PRNGKey(2), (2, 16, 8, 8), dtype=jnp.float32)
    x4 = x4.astype(jnp.bfloat16)
    out4 = jax.block_until_ready(global_avg_pool2d(x4))
    ref4 = jnp.mean(x4.astype(jnp.float32), axis=(2, 3)).astype(jnp.bfloat16).reshape(-1, 16)
    assert out4.shape == (2, 16), out4.shape
    assert jnp.allclose(out4.astype(jnp.float32), ref4.astype(jnp.float32),
                        atol=1e-2), "mismatch (bf16)"

    print("KERNEL_OK")
</pallas_src>

<mosaic_0001>
module attributes {stable_mosaic.version = 11 : i64} {
  func.func @_gap_kernel(%arg0: i32, %arg1: i32, %arg2: memref<8x256xf32, #tpu.memory_space<vmem>>, %arg3: memref<8x1xf32, #tpu.memory_space<vmem>>, %arg4: memref<8x128xf32, #tpu.memory_space<vmem>>) attributes {dimension_semantics = [#tpu.dimension_semantics<parallel>, #tpu.dimension_semantics<arbitrary>], iteration_bounds = array<i64: 1, 1>, scalar_prefetch = 0 : i64, scratch_operands = 1 : i64, tpu.core_type = #tpu.core_type<tc>, window_params = [{transform_indices = @transform_0, window_bounds = array<i64: 8, 256>}, {transform_indices = @transform_1, window_bounds = array<i64: 8, 1>}]} {
    %c0_i32 = arith.constant 0 : i32
    %0 = arith.cmpi eq, %arg1, %c0_i32 : i32
    %1 = arith.extui %0 : i1 to i32
    %c0_i32_0 = arith.constant 0 : i32
    %2 = arith.cmpi ne, %1, %c0_i32_0 : i32
    scf.if %2 {
      %cst = arith.constant 0.000000e+00 : f32
      %12 = vector.broadcast %cst : f32 to vector<8x128xf32>
      %c0_9 = arith.constant 0 : index
      %c0_10 = arith.constant 0 : index
      %13 = vector.load %arg4[%c0_9, %c0_10] : memref<8x128xf32, #tpu.memory_space<vmem>>, vector<8x128xf32>
      tpu.vector_store %arg4[%c0_9, %c0_10], %12 {strides = array<i32>} : memref<8x128xf32, #tpu.memory_space<vmem>>, vector<8x128xf32>,
    } else {
    }
    %c0 = arith.constant 0 : index
    %c0_1 = arith.constant 0 : index
    %3 = vector.load %arg2[%c0, %c0_1] : memref<8x256xf32, #tpu.memory_space<vmem>>, vector<8x128xf32>
    %c0_2 = arith.constant 0 : index
    %c128 = arith.constant 128 : index
    %4 = vector.load %arg2[%c0_2, %c128] : memref<8x256xf32, #tpu.memory_space<vmem>>, vector<8x128xf32>
    %5 = arith.addf %3, %4 : vector<8x128xf32>
    %c0_3 = arith.constant 0 : index
    %c0_4 = arith.constant 0 : index
    %6 = vector.load %arg4[%c0_3, %c0_4] : memref<8x128xf32, #tpu.memory_space<vmem>>, vector<8x128xf32>
    %7 = arith.addf %6, %5 : vector<8x128xf32>
    %c0_5 = arith.constant 0 : index
    %c0_6 = arith.constant 0 : index
    %8 = vector.load %arg4[%c0_5, %c0_6] : memref<8x128xf32, #tpu.memory_space<vmem>>, vector<8x128xf32>
    tpu.vector_store %arg4[%c0_5, %c0_6], %7 {strides = array<i32>} : memref<8x128xf32, #tpu.memory_space<vmem>>, vector<8x128xf32>,
    %c0_i32_7 = arith.constant 0 : i32
    %9 = arith.cmpi eq, %arg1, %c0_i32_7 : i32
    %10 = arith.extui %9 : i1 to i32
    %c0_i32_8 = arith.constant 0 : i32
    %11 = arith.cmpi ne, %10, %c0_i32_8 : i32
    scf.if %11 {
      %c0_9 = arith.constant 0 : index
      %c0_10 = arith.constant 0 : index
      %12 = vector.load %arg4[%c0_9, %c0_10] : memref<8x128xf32, #tpu.memory_space<vmem>>, vector<8x128xf32>
      %cst = arith.constant dense<0.000000e+00> : vector<8xf32>
      %13 = vector.multi_reduction <add>, %12, %cst [1] : vector<8x128xf32> to vector<8xf32>
      %14 = vector.shape_cast %13 : vector<8xf32> to vector<8x1xf32>
      %cst_11 = arith.constant 3.906250e-03 : f32
      %15 = vector.broadcast %cst_11 : f32 to vector<8x1xf32>
      %16 = arith.mulf %14, %15 : vector<8x1xf32>
      %c0_12 = arith.constant 0 : index
      %c0_13 = arith.constant 0 : index
      %17 = vector.load %arg3[%c0_12, %c0_13] : memref<8x1xf32, #tpu.memory_space<vmem>>, vector<8x1xf32>
      tpu.vector_store %arg3[%c0_12, %c0_13], %16 {strides = array<i32>} : memref<8x1xf32, #tpu.memory_space<vmem>>, vector<8x1xf32>,
    } else {
    }
    return
  }
  func.func @transform_0(%arg0: i32, %arg1: i32) -> (i32, i32) {
    %c0_i32 = arith.constant 0 : i32
    return %arg0, %arg1 : i32, i32
  }
  func.func @transform_1(%arg0: i32, %arg1: i32) -> (i32, i32) {
    %c0_i32 = arith.constant 0 : i32
    %c0_i32_0 = arith.constant 0 : i32
    return %arg0, %c0_i32 : i32, i32
  }
}

</mosaic_0001>

<bundles_post_ra>
// kernel: tpu_custom_call.1
= control target key start
LH: loop header
LB: loop body
LE: loop exit
PB: predicated region body
PF: predicated region fallthrough
CT: control target
= control target key end

     0   :  { %6 = vsyncpa [#allocation4], 0  ;;  %s70_s6 = smov [#allocation3]   ;;  %s96_s0 = inlined_call_operand.hbm [shape: f32[8,256], index: 0, kind: input, shape index: {}]   ;;  %s97_s1 = inlined_call_operand.vmem [shape: f32[8,1], index: 1, kind: output, shape index: {}]  }
   0x1   :  { %s13_s7 = sshll.u32 %s70_s6, 4  ;;  %s46_s10 = scalar_lea.hbm %s96_s0, 256  ;;  %s14_s7 = int_to_ptr.vmem [resolvable:$true] %s13_s7 }
   0x2   :  { %p47_p0 = scmp.ne.s32.totalorder %s96_s0, %s46_s10  ;;  %p50_p1 = scmp.lt.u32.totalorder %s46_s10, %s96_s0 }
   0x4   :  { %p52_p2 = pnand %p50_p1, %p47_p0 }
   0x6   :  { %55 = shalt.err (!%p52_p2)
}
   0x7   :  { %s56_s15 = scalar_lea.vmem %s14_s7, 256  ;;  %p61_p4 = scmp.lt.s32.totalorder %s14_s7, %s14_s7 }
   0x8   :  { %p57_p3 = scmp.ne.s32.totalorder %s14_s7, %s56_s15  ;;  %p62_p5 = scmp.lt.s32.totalorder %s56_s15, %s56_s15 }
   0xa   :  { %p63_p6 = por %p62_p5, %p61_p4 }
   0xc   :  { %p64_p7 = pnand %p63_p6, %p57_p3 }
   0xe   :  { %67 = shalt.err (!%p64_p7)
}
   0xf   :  { %16 = dma.hbm_to_vmem [thread:$0]  %s96_s0, 256, %s14_s7, [#allocation4]  }
  0x10   :  { %68 = dma.done.wait [#allocation4], 256  }
  0x11   :  { %69 = vsyncadd [#allocation4], 4294967040  ;;  %v25_v0 = vld [vmem:[#allocation3] sm:$0xff]  ;;  %v26_v1 = vld [vmem:[#allocation3 + $0x8] sm:$0xff]  ;;  %vm38_vm0 = vcmask 7168  }
  0x12   :  { %v27_v2 = vadd.f32 %v26_v1, %v25_v0 }
  0x14   :  { %35 = vadd.xlane.f32.xlu0 %v27_v2 }
  0xa1   :  { %v36_v3 = vpop.xlane.xlu0 %35 }
  0xa2   :  { %v37_v4 = vmul.f32 0.00390625, %v36_v3 }
  0xa4   :  { %39 = vst.msk [vmem:[%s97_s1] sm:$0xff] %vm38_vm0, %v37_v4 }
  0xa5   :  { %44 = vsyncpa [#allocation4], 1 }

</bundles_post_ra>
